<compile_context>
chip_gen: v5e
topology: v5e:2x2
jax: 0.10.0
libtpu: 0.0.40
codegen_flags: <defaults>
</compile_context>

<pallas_src>
import jax
import jax.numpy as jnp
import numpy as np
from jax.experimental import pallas as pl
from jax.experimental.pallas import tpu as pltpu


def _round_up(x, m):
    return (x + m - 1) // m * m


def _critic_kernel(s_ref, a_ref, w1_ref, bw_ref, w2_ref, b3_ref, o_ref):
    # s_ref: (TB, S)   a_ref: (TB, A)   w1_ref: (S+A, H)
    # bw_ref: (3, H) = [b1; b2; w3_row]   w2_ref: (H, H)   b3_ref: (1,) SMEM
    S = s_ref.shape[1]
    A = a_ref.shape[1]

    # ---- Layer 1: fused cat + Linear as rank-1 VPU FMAs (no MXU pass). ----
    # cat(s, a) @ W1 + b1 == b1 + sum_k s[:,k]*W1[k,:] + sum_k a[:,k]*W1[S+k,:]
    x1 = bw_ref[0:1, :] + s_ref[:, 0:1] * w1_ref[0:1, :]
    for k in range(1, S):
        x1 = x1 + s_ref[:, k:k + 1] * w1_ref[k:k + 1, :]
    for k in range(A):
        x1 = x1 + a_ref[:, k:k + 1] * w1_ref[S + k:S + k + 1, :]
    h1 = jnp.maximum(x1, 0.0)

    # ---- Layer 2: (TB, H) @ (H, H) on the MXU (f32 or bf16 operands). ----
    w2 = w2_ref[...]
    h2 = jnp.dot(h1.astype(w2.dtype), w2, preferred_element_type=jnp.float32)
    h2 = jnp.maximum(h2 + bw_ref[1:2, :], 0.0)

    # ---- Layer 3 (H -> 1): VPU multiply + cross-lane sum (XLU). ----
    q = jnp.sum(h2 * bw_ref[2:3, :], axis=-1, keepdims=True) + b3_ref[0]
    o_ref[...] = q.astype(o_ref.dtype)


def critic_forward(state, action, params, *, batch_tile=512, use_bf16=False):
    """state: (B, S) f32, action: (B, A) f32 -> (B, 1) f32."""
    w1, bw, w2, b3 = params
    B, S = state.shape
    A = action.shape[1]
    H = w2.shape[1]

    if use_bf16:
        # Feed bf16 to the MXU (v6e/v7x); accumulation stays f32 in-kernel.
        w2 = w2.astype(jnp.bfloat16)

    # Batch tile: big tiles amortize per-step overhead for real replay
    # batches; tiny demo batches get a single tile rounded up to 8 sublanes.
    tb = batch_tile if B >= batch_tile else _round_up(B, 8)
    Bp = _round_up(B, tb)
    if Bp != B:
        state = jnp.pad(state, ((0, Bp - B), (0, 0)))
        action = jnp.pad(action, ((0, Bp - B), (0, 0)))

    out = pl.pallas_call(
        _critic_kernel,
        out_shape=jax.ShapeDtypeStruct((Bp, 1), jnp.float32),
        grid=(Bp // tb,),
        in_specs=[
            pl.BlockSpec((tb, S), lambda i: (i, 0)),             # state (streamed)
            pl.BlockSpec((tb, A), lambda i: (i, 0)),             # action (streamed)
            pl.BlockSpec((S + A, H), lambda i: (0, 0)),          # W1 (resident)
            pl.BlockSpec((3, H), lambda i: (0, 0)),              # [b1; b2; w3_row]
            pl.BlockSpec((H, H), lambda i: (0, 0)),              # W2 (resident)
            pl.BlockSpec(memory_space=pltpu.MemorySpace.SMEM),   # b3 scalar
        ],
        out_specs=pl.BlockSpec((tb, 1), lambda i: (i, 0)),
        compiler_params=pltpu.CompilerParams(
            dimension_semantics=("parallel",)),
    )(state, action, w1, bw, w2, b3)

    return out[:B]


def init_critic_params(key, state_dim, action_dim, hidden_size):
    """Mirror nn.Linear default init: U(-1/sqrt(fan_in), 1/sqrt(fan_in)).

    Returns W1 as a single (S+A, H) array (PyTorch weight.T), biases and the
    final-layer weight row packed into one (3, H) array, and b3 as (1,).
    """
    input_size = state_dim + action_dim
    ks = jax.random.split(key, 6)

    def linear(kw, kb, fan_in, fan_out):
        bound = 1.0 / np.sqrt(fan_in)
        w = jax.random.uniform(kw, (fan_in, fan_out), jnp.float32, -bound, bound)
        b = jax.random.uniform(kb, (fan_out,), jnp.float32, -bound, bound)
        return w, b

    w1, b1 = linear(ks[0], ks[1], input_size, hidden_size)
    w2, b2 = linear(ks[2], ks[3], hidden_size, hidden_size)
    w3, b3 = linear(ks[4], ks[5], hidden_size, 1)

    bw = jnp.stack([b1, b2, w3[:, 0]], axis=0)   # (3, H): b1, b2, w3 row
    return w1, bw, w2, b3                        # w1 (S+A,H), w2 (H,H), b3 (1,)


def critic_reference(state, action, params):
    """Pure-JAX reference matching the PyTorch forward."""
    w1, bw, w2, b3 = params
    x = jnp.concatenate([state, action], axis=1)
    x = jnp.maximum(x @ w1 + bw[0], 0.0)
    x = jnp.maximum(x @ w2 + bw[1], 0.0)
    return x @ bw[2][:, None] + b3


if __name__ == "__main__":
    # MountainCarContinuous: state_dim=2, action_dim=1 -> input_size=3
    batch, state_dim, action_dim, hidden = 8, 2, 1, 32

    key = jax.random.PRNGKey(0)
    k_params, k_state, k_action = jax.random.split(key, 3)

    params = init_critic_params(k_params, state_dim, action_dim, hidden)
    state = jax.random.normal(k_state, (batch, state_dim), jnp.float32)
    action = jax.random.normal(k_action, (batch, action_dim), jnp.float32)

    out = critic_forward(state, action, params)
    out = jax.block_until_ready(out)

    ref = critic_reference(state, action, params)
    np.testing.assert_allclose(np.asarray(out), np.asarray(ref),
                               rtol=1e-5, atol=1e-5)
    assert out.shape == (batch, 1)
    print("KERNEL_OK")
</pallas_src>

<mosaic_0001>
module attributes {stable_mosaic.version = 11 : i64} {
  func.func @_critic_kernel(%arg0: i32, %arg1: memref<8x2xf32, #tpu.memory_space<vmem>>, %arg2: memref<8x1xf32, #tpu.memory_space<vmem>>, %arg3: memref<3x32xf32, #tpu.memory_space<vmem>>, %arg4: memref<3x32xf32, #tpu.memory_space<vmem>>, %arg5: memref<32x32xf32, #tpu.memory_space<vmem>>, %arg6: memref<1xf32, #tpu.memory_space<smem>>, %arg7: memref<8x1xf32, #tpu.memory_space<vmem>>) attributes {dimension_semantics = [#tpu.dimension_semantics<parallel>], iteration_bounds = array<i64: 1>, scalar_prefetch = 0 : i64, scratch_operands = 0 : i64, tpu.core_type = #tpu.core_type<tc>, window_params = [{transform_indices = @transform_0, window_bounds = array<i64: 8, 2>}, {transform_indices = @transform_1, window_bounds = array<i64: 8, 1>}, {pipeline_mode = #tpu.pipeline_mode<synchronous>, transform_indices = @transform_2, window_bounds = array<i64: 3, 32>}, {pipeline_mode = #tpu.pipeline_mode<synchronous>, transform_indices = @transform_3, window_bounds = array<i64: 3, 32>}, {pipeline_mode = #tpu.pipeline_mode<synchronous>, transform_indices = @transform_4, window_bounds = array<i64: 32, 32>}, {transform_indices = @transform_5, window_bounds = array<i64: 1>}, {transform_indices = @transform_6, window_bounds = array<i64: 8, 1>}]} {
    %c0 = arith.constant 0 : index
    %c0_0 = arith.constant 0 : index
    %0 = vector.load %arg4[%c0, %c0_0] : memref<3x32xf32, #tpu.memory_space<vmem>>, vector<1x32xf32>
    %c0_1 = arith.constant 0 : index
    %c0_2 = arith.constant 0 : index
    %1 = vector.load %arg1[%c0_1, %c0_2] : memref<8x2xf32, #tpu.memory_space<vmem>>, vector<8x1xf32>
    %c0_3 = arith.constant 0 : index
    %c0_4 = arith.constant 0 : index
    %2 = vector.load %arg3[%c0_3, %c0_4] : memref<3x32xf32, #tpu.memory_space<vmem>>, vector<1x32xf32>
    %3 = vector.broadcast %1 : vector<8x1xf32> to vector<8x32xf32>
    %4 = vector.broadcast %2 : vector<1x32xf32> to vector<8x32xf32>
    %5 = arith.mulf %3, %4 : vector<8x32xf32>
    %6 = vector.broadcast %0 : vector<1x32xf32> to vector<8x32xf32>
    %7 = arith.addf %6, %5 : vector<8x32xf32>
    %c0_5 = arith.constant 0 : index
    %c1 = arith.constant 1 : index
    %8 = vector.load %arg1[%c0_5, %c1] : memref<8x2xf32, #tpu.memory_space<vmem>>, vector<8x1xf32>
    %c1_6 = arith.constant 1 : index
    %c0_7 = arith.constant 0 : index
    %9 = vector.load %arg3[%c1_6, %c0_7] : memref<3x32xf32, #tpu.memory_space<vmem>>, vector<1x32xf32>
    %10 = vector.broadcast %8 : vector<8x1xf32> to vector<8x32xf32>
    %11 = vector.broadcast %9 : vector<1x32xf32> to vector<8x32xf32>
    %12 = arith.mulf %10, %11 : vector<8x32xf32>
    %13 = arith.addf %7, %12 : vector<8x32xf32>
    %c0_8 = arith.constant 0 : index
    %c0_9 = arith.constant 0 : index
    %14 = vector.load %arg2[%c0_8, %c0_9] : memref<8x1xf32, #tpu.memory_space<vmem>>, vector<8x1xf32>
    %c2 = arith.constant 2 : index
    %c0_10 = arith.constant 0 : index
    %15 = vector.load %arg3[%c2, %c0_10] : memref<3x32xf32, #tpu.memory_space<vmem>>, vector<1x32xf32>
    %16 = vector.broadcast %14 : vector<8x1xf32> to vector<8x32xf32>
    %17 = vector.broadcast %15 : vector<1x32xf32> to vector<8x32xf32>
    %18 = arith.mulf %16, %17 : vector<8x32xf32>
    %19 = arith.addf %13, %18 : vector<8x32xf32>
    %cst = arith.constant 0.000000e+00 : f32
    %20 = vector.broadcast %cst : f32 to vector<8x32xf32>
    %21 = arith.maximumf %19, %20 : vector<8x32xf32>
    %c0_11 = arith.constant 0 : index
    %c0_12 = arith.constant 0 : index
    %22 = vector.load %arg5[%c0_11, %c0_12] : memref<32x32xf32, #tpu.memory_space<vmem>>, vector<32x32xf32>
    %cst_13 = arith.constant dense<0.000000e+00> : vector<8x32xf32>
    %23 = tpu.matmul %21, %22, %cst_13 {dimension_numbers = #tpu.dot_dimension_numbers<[1], [0], [0], [1], [0, 0, 1, 1], [], []>} : vector<8x32xf32>, vector<32x32xf32>, vector<8x32xf32> -> vector<8x32xf32>
    %c1_14 = arith.constant 1 : index
    %c0_15 = arith.constant 0 : index
    %24 = vector.load %arg4[%c1_14, %c0_15] : memref<3x32xf32, #tpu.memory_space<vmem>>, vector<1x32xf32>
    %25 = vector.broadcast %24 : vector<1x32xf32> to vector<8x32xf32>
    %26 = arith.addf %23, %25 : vector<8x32xf32>
    %cst_16 = arith.constant 0.000000e+00 : f32
    %27 = vector.broadcast %cst_16 : f32 to vector<8x32xf32>
    %28 = arith.maximumf %26, %27 : vector<8x32xf32>
    %c2_17 = arith.constant 2 : index
    %c0_18 = arith.constant 0 : index
    %29 = vector.load %arg4[%c2_17, %c0_18] : memref<3x32xf32, #tpu.memory_space<vmem>>, vector<1x32xf32>
    %30 = vector.broadcast %29 : vector<1x32xf32> to vector<8x32xf32>
    %31 = arith.mulf %28, %30 : vector<8x32xf32>
    %cst_19 = arith.constant dense<0.000000e+00> : vector<8xf32>
    %32 = vector.multi_reduction <add>, %31, %cst_19 [1] : vector<8x32xf32> to vector<8xf32>
    %33 = vector.shape_cast %32 : vector<8xf32> to vector<8x1xf32>
    %c0_20 = arith.constant 0 : index
    %34 = memref.load %arg6[%c0_20] : memref<1xf32, #tpu.memory_space<smem>>
    %35 = vector.broadcast %34 : f32 to vector<8x1xf32>
    %36 = arith.addf %33, %35 : vector<8x1xf32>
    %c0_21 = arith.constant 0 : index
    %c0_22 = arith.constant 0 : index
    %37 = vector.load %arg7[%c0_21, %c0_22] : memref<8x1xf32, #tpu.memory_space<vmem>>, vector<8x1xf32>
    tpu.vector_store %arg7[%c0_21, %c0_22], %36 {strides = array<i32>} : memref<8x1xf32, #tpu.memory_space<vmem>>, vector<8x1xf32>,
    return
  }
  func.func @transform_0(%arg0: i32) -> (i32, i32) {
    %c0_i32 = arith.constant 0 : i32
    %c0_i32_0 = arith.constant 0 : i32
    return %arg0, %c0_i32 : i32, i32
  }
  func.func @transform_1(%arg0: i32) -> (i32, i32) {
    %c0_i32 = arith.constant 0 : i32
    %c0_i32_0 = arith.constant 0 : i32
    return %arg0, %c0_i32 : i32, i32
  }
  func.func @transform_2(%arg0: i32) -> (i32, i32) {
    %c0_i32 = arith.constant 0 : i32
    %c0_i32_0 = arith.constant 0 : i32
    %c0_i32_1 = arith.constant 0 : i32
    return %c0_i32, %c0_i32_0 : i32, i32
  }
  func.func @transform_3(%arg0: i32) -> (i32, i32) {
    %c0_i32 = arith.constant 0 : i32
    %c0_i32_0 = arith.constant 0 : i32
    %c0_i32_1 = arith.constant 0 : i32
    return %c0_i32, %c0_i32_0 : i32, i32
  }
  func.func @transform_4(%arg0: i32) -> (i32, i32) {
    %c0_i32 = arith.constant 0 : i32
    %c0_i32_0 = arith.constant 0 : i32
    %c0_i32_1 = arith.constant 0 : i32
    return %c0_i32, %c0_i32_0 : i32, i32
  }
  func.func @transform_5(%arg0: i32) -> i32 {
    %c0_i32 = arith.constant 0 : i32
    %c0_i32_0 = arith.constant 0 : i32
    return %c0_i32 : i32
  }
  func.func @transform_6(%arg0: i32) -> (i32, i32) {
    %c0_i32 = arith.constant 0 : i32
    %c0_i32_0 = arith.constant 0 : i32
    return %arg0, %c0_i32 : i32, i32
  }
}

</mosaic_0001>

<bundles_post_ra>
// kernel: tpu_custom_call.1
= control target key start
LH: loop header
LB: loop body
LE: loop exit
PB: predicated region body
PF: predicated region fallthrough
CT: control target
= control target key end

     0   :  { %12 = vsyncpa [#allocation4], 0  ;;  %s160_s24 = smov [#allocation3]   ;;  %s161_s26 = smov 128   ;;  %s233_s0 = inlined_call_operand.vmem [shape: f32[8,2], index: 0, kind: input, shape index: {}]   ;;  %s234_s1 = inlined_call_operand.vmem [shape: f32[8,1], index: 1, kind: input, shape index: {}]   ;;  %s235_s2 = inlined_call_operand.vmem [shape: f32[3,32], index: 2, kind: input, shape index: {}]   ;;  %s236_s3 = inlined_call_operand.vmem [shape: f32[3,32], index: 3, kind: input, shape index: {}]   ;;  %s237_s4 = inlined_call_operand.hbm [shape: f32[32,32], index: 4, kind: input, shape index: {}]   ;;  %s238_s5 = inlined_call_operand.<no memory space> [shape: f32[1], index: 5, kind: input, shape index: {}]   ;;  %s239_s6 = inlined_call_operand.vmem [shape: f32[8,1], index: 6, kind: output, shape index: {}]  }
   0x1   :  { %s25_s23 = sshll.u32 %s237_s4, 4  ;;  %s27_s25 = sshll.u32 %s160_s24, 4  ;;  %s26_s23 = int_to_ptr.hbm [resolvable:$true] %s25_s23  ;;  %s28_s25 = int_to_ptr.vmem [resolvable:$true] %s27_s25 }
   0x2   :  { %s162_s27 = smov 8  }
   0x3   :  { %33 = dma.hbm_to_vmem [thread:$0]  %s26_s23, 512, %s28_s25, [#allocation4], %s161_s26, %s161_s26, %s162_s27  }
   0x4   :  { %158 = dma.done.wait [#allocation4], 512  }
   0x5   :  { %159 = vsyncadd [#allocation4], 4294966784  ;;  %v163_v0 = vmov 0   ;;  %v41_v1 = vld [vmem:[%s233_s0] sm:$0xff]  ;;  %v164_v3 = vmov 1   ;;  %v74_v4 = vld [vmem:[#allocation3 + $0x18] sm:$0xff]  ;;  %v109_v29 = vstv %s238_s5 }
   0x6   :  { %124 = vset.pattern.permute.xlu0 %v163_v0  ;;  %126 = vset.pattern.permute.xlu1 %v163_v0  ;;  %v60_v2 = vld [vmem:[%s234_s1] sm:$0xff]  ;;  %v73_v5 = vld [vmem:[#allocation3 + $0x10] sm:$0xff]  ;;  %v72_v6 = vld [vmem:[#allocation3 + $0x8] sm:$0xff]  ;;  %vm77_vm0 = vcmask 261120   ;;  %vm111_vm1 = vcmask 7168  }
   0x7   :  { %45 = vperm.xlu0 %124, %v41_v1   ;;  %64 = vperm.xlu1 %126, %v60_v2   ;;  %v71_v7 = vld [vmem:[#allocation3] sm:$0xff] }
   0x8   :  { %93 = vmatpush.msra.mxu0 %v74_v4  ;;  %v128_v9 = vld [vmem:[%s235_s2] ss:$0 sm:$0xff]  ;;  %v130_v12 = vld [vmem:[%s235_s2 + $0x1] ss:$0 sm:$0xff]  ;;  %v131_v13 = vld [vmem:[%s235_s2 + $0x2] ss:$0 sm:$0xff] }
   0x9   :  { %v129_v11 = vld [vmem:[%s236_s3] ss:$0 sm:$0xff]  ;;  %v132_v22 = vld [vmem:[%s236_s3 + $0x1] ss:$0 sm:$0xff]  ;;  %v133_v25 = vld [vmem:[%s236_s3 + $0x2] ss:$0 sm:$0xff] }
   0xa   :  { %94 = vmatpush.msra.mxu0 %v73_v5 }
   0xc   :  { %95 = vmatpush.msra.mxu0 %v72_v6 }
   0xe   :  { %96 = vmatpush.msra.mxu0 %v71_v7 }
   0xf   :  { %125 = vset.pattern.permute.xlu0 %v164_v3 }
  0x10   :  { %54 = vperm.xlu0 %125, %v41_v1  }
  0x18   :  { %127 = vset.pattern.permute.xlu0 %v163_v0 }
  0x79   :  { %v46_v8 = vpop.permute.xlu0 %45  ;;  %v65_v14 = vpop.permute.xlu1 %64 }
  0x7a   :  { %v49_v10 = vmul.f32 %v128_v9, %v46_v8  ;;  %v68_v18 = vmul.f32 %v131_v13, %v65_v14 }
  0x7c   :  { %v51_v16 = vadd.f32 %v129_v11, %v49_v10 }
  0x82   :  { %v55_v15 = vpop.permute.xlu0 %54 }
  0x83   :  { %v58_v17 = vmul.f32 %v130_v12, %v55_v15 }
  0x85   :  { %v59_v19 = vadd.f32 %v58_v17, %v51_v16 }
  0x87   :  { %v69_v20 = vadd.f32 %v68_v18, %v59_v19 }
  0x89   :  { %v70_v21 = vmax.f32 %v69_v20, 0.0 }
  0x8b   :  { %118 = vmatmul.msk.f32.vlgmr.msra.gmra.mxu0 %vm77_vm0, %v70_v21 }
 0x108   :  { %v98_v23 = vpop.f32.mrf.mxu0 }
 0x109   :  { %v99_v24 = vadd.f32 %v132_v22, %v98_v23 }
 0x10b   :  { %v101_v26 = vmax.f32 %v99_v24, 0.0 }
 0x10d   :  { %v104_v27 = vmul.f32 %v133_v25, %v101_v26 }
 0x10f   :  { %v105_v28 = vsel %vm77_vm0, %v104_v27, 0.0 }
 0x110   :  { %106 = vadd.xlane.f32.xlu1 %v105_v28 }
 0x183   :  { %v107_v30 = vpop.xlane.xlu1 %106 }
 0x184   :  { %v110_v31 = vadd.f32 %v109_v29, %v107_v30 }
 0x186   :  { %112 = vst.msk [vmem:[%s239_s6] sm:$0xff] %vm111_vm1, %v110_v31 }
 0x187   :  { %117 = vsyncpa [#allocation4], 1 }

</bundles_post_ra>
